<compile_context>
chip_gen: v7x
topology: tpu7x:2x2x1
jax: 0.10.0
libtpu: 0.0.40
codegen_flags: <defaults>
</compile_context>

<pallas_src>
import jax
import jax.numpy as jnp
from jax.experimental import pallas as pl
from jax.experimental.pallas import tpu as pltpu


def _round_up(x, m):
    return ((x + m - 1) // m) * m


def _linear_kernel(x_ref, wt_ref, h_ref):
    # x_ref: [TM_H, F], wt_ref: [F, D] (resident across grid), h_ref: [TM_H, D]
    h_ref[...] = jnp.dot(
        x_ref[...], wt_ref[...], preferred_element_type=jnp.float32
    ).astype(h_ref.dtype)


def _spmm_kernel(adj_ref, h_ref, bias_ref, out_ref, acc_ref):
    # adj_ref: [TM, TK], h_ref: [TK, D], bias_ref: [1, D], out_ref: [TM, D]
    # acc_ref: fp32 VMEM scratch [TM, D], accumulated over the contraction grid axis.
    k = pl.program_id(1)

    @pl.when(k == 0)
    def _():
        acc_ref[...] = jnp.zeros_like(acc_ref)

    acc_ref[...] += jnp.dot(
        adj_ref[...], h_ref[...], preferred_element_type=jnp.float32
    )

    @pl.when(k == pl.num_programs(1) - 1)
    def _():
        out_ref[...] = (acc_ref[...] + bias_ref[...]).astype(out_ref.dtype)


def sugrl_gcn_forward(seq, adj, weight, bias=None, *, compute_dtype=jnp.bfloat16):
    """seq: [1, N, F], adj: [N, N] dense, weight: [D, F] (torch Linear layout)."""
    assert seq.ndim == 3 and seq.shape[0] == 1
    x = seq[0]                                   # [N, F]
    N, F = x.shape
    D = weight.shape[0]
    out_dtype = seq.dtype

    # ---- tile-size / padding selection (bounded VMEM, (8,128)-aligned blocks) ----
    if N <= 512:
        n_pad = _round_up(N, 8)
        tm, tk, tm_h = n_pad, n_pad, n_pad       # single block (= full dims) per axis
    else:
        n_pad = _round_up(N, 512)
        tm, tk, tm_h = 256, 512, 512             # adj tile 256x512 bf16 = 256 KiB

    def _pad2d(a, rows, cols, dtype):
        a = a.astype(dtype)
        if a.shape == (rows, cols):
            return a
        return jnp.zeros((rows, cols), dtype).at[: a.shape[0], : a.shape[1]].set(a)

    x_p = _pad2d(x, n_pad, F, compute_dtype)                  # zero rows -> h rows = 0
    adj_p = _pad2d(adj, n_pad, n_pad, compute_dtype)          # zero cols -> contribute 0
    wt = weight.T.astype(compute_dtype)                       # [F, D]
    bias_arr = (
        jnp.zeros((1, D), jnp.float32)
        if bias is None
        else jnp.asarray(bias, jnp.float32).reshape(1, D)
    )

    vmem_limit = 32 * 1024 * 1024                              # fits v5e/v6e/v7x

    # ---- stage 1: h = X @ W^T, computed once (row-tiled) ----
    h = pl.pallas_call(
        _linear_kernel,
        out_shape=jax.ShapeDtypeStruct((n_pad, D), compute_dtype),
        grid_spec=pltpu.PrefetchScalarGridSpec(
            num_scalar_prefetch=0,
            grid=(n_pad // tm_h,),
            in_specs=[
                pl.BlockSpec((tm_h, F), lambda i: (i, 0)),
                pl.BlockSpec((F, D), lambda i: (0, 0)),        # W^T stays resident
            ],
            out_specs=pl.BlockSpec((tm_h, D), lambda i: (i, 0)),
        ),
        compiler_params=pltpu.CompilerParams(
            dimension_semantics=("parallel",),
            vmem_limit_bytes=vmem_limit,
        ),
    )(x_p, wt)

    # ---- stage 2: out = adj @ h (+ bias), tiled with fp32 accumulator ----
    out_p = pl.pallas_call(
        _spmm_kernel,
        out_shape=jax.ShapeDtypeStruct((n_pad, D), out_dtype),
        grid_spec=pltpu.PrefetchScalarGridSpec(
            num_scalar_prefetch=0,
            grid=(n_pad // tm, n_pad // tk),                   # contraction axis last
            in_specs=[
                pl.BlockSpec((tm, tk), lambda i, k: (i, k)),   # adj tile (streamed)
                pl.BlockSpec((tk, D), lambda i, k: (k, 0)),    # h tile
                pl.BlockSpec((1, D), lambda i, k: (0, 0)),     # bias (resident)
            ],
            out_specs=pl.BlockSpec((tm, D), lambda i, k: (i, 0)),
            scratch_shapes=[pltpu.VMEM((tm, D), jnp.float32)],
        ),
        compiler_params=pltpu.CompilerParams(
            dimension_semantics=("parallel", "arbitrary"),
            vmem_limit_bytes=vmem_limit,
        ),
    )(adj_p, h, bias_arr)

    return out_p[None, :N, :]                                  # [1, N, D]


def xavier_uniform(key, shape, dtype=jnp.float32):
    # matches torch.nn.init.xavier_uniform_ for a Linear weight [out, in]
    fan_out, fan_in = shape
    limit = jnp.sqrt(6.0 / (fan_in + fan_out))
    return jax.random.uniform(key, shape, dtype, minval=-limit, maxval=limit)


if __name__ == "__main__":
    key = jax.random.PRNGKey(0)
    k_x, k_a, k_w = jax.random.split(key, 3)

    N = 8                # number of nodes (seq length)
    in_channels = 32
    dim_out = 128

    seq = jax.random.normal(k_x, (1, N, in_channels), dtype=jnp.float32)
    # dense "sparse" adjacency: random nonneg, row-normalized
    adj_raw = jax.random.uniform(k_a, (N, N), dtype=jnp.float32)
    adj = adj_raw / jnp.sum(adj_raw, axis=-1, keepdims=True)

    weight = xavier_uniform(k_w, (dim_out, in_channels))  # torch Linear weight layout
    bias = None                                           # bias=False (default)

    out = sugrl_gcn_forward(seq, adj, weight, bias)
    jax.block_until_ready(out)

    # sanity check against plain-JAX fp32 reference (kernel computes in bf16 / fp32 acc)
    ref = (adj @ (seq[0] @ weight.T))[None]
    assert out.shape == (1, N, dim_out)
    assert jnp.allclose(out, ref, atol=5e-2, rtol=5e-2)

    print("KERNEL_OK")
</pallas_src>

<mosaic_0001>
module attributes {stable_mosaic.version = 11 : i64} {
  func.func @_linear_kernel(%arg0: i32, %arg1: memref<8x32xbf16, #tpu.memory_space<vmem>>, %arg2: memref<32x128xbf16, #tpu.memory_space<vmem>>, %arg3: memref<8x128xbf16, #tpu.memory_space<vmem>>) attributes {dimension_semantics = [#tpu.dimension_semantics<parallel>], iteration_bounds = array<i64: 1>, scalar_prefetch = 0 : i64, scratch_operands = 0 : i64, tpu.core_type = #tpu.core_type<tc>, window_params = [{transform_indices = @transform_0, window_bounds = array<i64: 8, 32>}, {pipeline_mode = #tpu.pipeline_mode<synchronous>, transform_indices = @transform_1, window_bounds = array<i64: 32, 128>}, {transform_indices = @transform_2, window_bounds = array<i64: 8, 128>}]} {
    %c0 = arith.constant 0 : index
    %c0_0 = arith.constant 0 : index
    %0 = vector.load %arg1[%c0, %c0_0] : memref<8x32xbf16, #tpu.memory_space<vmem>>, vector<8x32xbf16>
    %c0_1 = arith.constant 0 : index
    %c0_2 = arith.constant 0 : index
    %1 = vector.load %arg2[%c0_1, %c0_2] : memref<32x128xbf16, #tpu.memory_space<vmem>>, vector<32x128xbf16>
    %cst = arith.constant dense<0.000000e+00> : vector<8x128xf32>
    %2 = tpu.matmul %0, %1, %cst {dimension_numbers = #tpu.dot_dimension_numbers<[1], [0], [0], [1], [0, 0, 1, 1], [], []>} : vector<8x32xbf16>, vector<32x128xbf16>, vector<8x128xf32> -> vector<8x128xf32>
    %3 = arith.truncf %2 : vector<8x128xf32> to vector<8x128xbf16>
    %c0_3 = arith.constant 0 : index
    %c0_4 = arith.constant 0 : index
    %4 = vector.load %arg3[%c0_3, %c0_4] : memref<8x128xbf16, #tpu.memory_space<vmem>>, vector<8x128xbf16>
    tpu.vector_store %arg3[%c0_3, %c0_4], %3 {strides = array<i32>} : memref<8x128xbf16, #tpu.memory_space<vmem>>, vector<8x128xbf16>,
    return
  }
  func.func @transform_0(%arg0: i32) -> (i32, i32) {
    %c0_i32 = arith.constant 0 : i32
    %c0_i32_0 = arith.constant 0 : i32
    return %arg0, %c0_i32 : i32, i32
  }
  func.func @transform_1(%arg0: i32) -> (i32, i32) {
    %c0_i32 = arith.constant 0 : i32
    %c0_i32_0 = arith.constant 0 : i32
    %c0_i32_1 = arith.constant 0 : i32
    return %c0_i32, %c0_i32_0 : i32, i32
  }
  func.func @transform_2(%arg0: i32) -> (i32, i32) {
    %c0_i32 = arith.constant 0 : i32
    %c0_i32_0 = arith.constant 0 : i32
    return %arg0, %c0_i32 : i32, i32
  }
}

</mosaic_0001>

<bundles_post_ra>
// kernel: tpu_custom_call.1
= control target key start
LH: loop header
LB: loop body
LE: loop exit
PB: predicated region body
PF: predicated region fallthrough
CT: control target
= control target key end

     0   :  { %7 = vsyncpa [#allocation3], 0  ;;  %s278_s0 = inlined_call_operand.hbm [shape: bf16[8,32], index: 0, kind: input, shape index: {}]   ;;  %s279_s1 = inlined_call_operand.hbm [shape: bf16[32,128], index: 1, kind: input, shape index: {}]   ;;  %s280_s2 = inlined_call_operand.hbm [shape: bf16[8,128], index: 2, kind: output, shape index: {}]  }
   0x1   :  { %8 = vsyncpa [#allocation6], 0 }
   0x2   :  { %9 = vsyncpa [#allocation4], 0  ;;  %s213_s9 = smov [#allocation2]   ;;  %s214_s11 = smov [#allocation5]  }
   0x3   :  { %s16_s10 = sshll.u32 %s213_s9, 4  ;;  %s25_s12 = sshll.u32 %s214_s11, 4  ;;  %s17_s10 = int_to_ptr.vmem [resolvable:$true] %s16_s10  ;;  %s235_s12 = int_to_ptr.vmem [resolvable:$true] %s25_s12 }
   0x4   :  { %s141_s15 = scalar_lea.hbm %s278_s0, 64 }
   0x5   :  { %p142_p0 = scmp.ne.s32.totalorder %s278_s0, %s141_s15  ;;  %p145_p1 = scmp.lt.u32.totalorder %s141_s15, %s278_s0 }
   0x7   :  { %p147_p2 = pnand %p145_p1, %p142_p0 }
   0x9   :  { %150 = shalt.err (!%p147_p2)
}
   0xa   :  { %s151_s20 = scalar_lea.vmem %s17_s10, 64  ;;  %p156_p4 = scmp.lt.s32.totalorder %s17_s10, %s17_s10 }
   0xb   :  { %p152_p3 = scmp.ne.s32.totalorder %s17_s10, %s151_s20  ;;  %p157_p5 = scmp.lt.s32.totalorder %s151_s20, %s151_s20 }
   0xd   :  { %p158_p6 = por %p157_p5, %p156_p4 }
   0xf   :  { %p159_p7 = pnand %p158_p6, %p152_p3 }
  0x11   :  { %162 = shalt.err (!%p159_p7)
}
  0x12   :  { %19 = dma.hbm_to_vmem [thread:$0]  %s278_s0, 64, %s17_s10, [#allocation3]  }
  0x13   :  { %s163_s25 = scalar_lea.hbm %s279_s1, 256 }
  0x14   :  { %p164_p8 = scmp.ne.s32.totalorder %s279_s1, %s163_s25  ;;  %p167_p9 = scmp.lt.u32.totalorder %s163_s25, %s279_s1 }
  0x16   :  { %p169_p10 = pnand %p167_p9, %p164_p8 }
  0x18   :  { %172 = shalt.err (!%p169_p10)
}
  0x19   :  { %s173_s30 = scalar_lea.vmem %s235_s12, 256  ;;  %p178_p12 = scmp.lt.s32.totalorder %s235_s12, %s235_s12 }
  0x1a   :  { %p174_p11 = scmp.ne.s32.totalorder %s235_s12, %s173_s30  ;;  %p179_p13 = scmp.lt.s32.totalorder %s173_s30, %s173_s30 }
  0x1c   :  { %p180_p0 = por %p179_p13, %p178_p12 }
  0x1e   :  { %p181_p1 = pnand %p180_p0, %p174_p11 }
  0x20   :  { %184 = shalt.err (!%p181_p1)
}
  0x21   :  { %s215_s0 = smov 64   ;;  %s216_s3 = smov 4  }
  0x22   :  { %31 = dma.hbm_to_vmem [thread:$0]  %s279_s1, 256, %s235_s12, [#allocation6], %s215_s0, %s215_s0, %s216_s3  }
  0x23   :  { %207 = dma.done.wait [#allocation3], 64  }
  0x24   :  { %208 = vsyncadd [#allocation3], 4294967232 }
  0x25   :  { %209 = dma.done.wait [#allocation6], 256  }
  0x26   :  { %210 = vsyncadd [#allocation6], 4294967040  ;;  %v217_v0 = vmov 0.0   ;;  %vm218_vm0 = vmmov 0   ;;  %v139_v1 = vld [vmem:[#allocation5] sm:$0xff]   ;;  %v140_v2 = vld [vmem:[#allocation5 + $0x8] sm:$0xff]  }
  0x27   :  { %124 = vmatprep.subr.bf16.mxu0 %v217_v0  ;;  %128 = vmatprep.mubr.msk.bf16.mxu0 %vm218_vm0, %v217_v0  ;;  %v39_v3 = vld [vmem:[#allocation2] sm:$0xf]  ;;  %vm56_vm1 = vcmask 261120   ;;  %s219_s6 = smov [#allocation7]  }
  0x28   :  { %125 = vmatpush3.bf16.msra.mxu0 %v139_v1  ;;  %s108_s7 = sshll.u32 %s219_s6, 4  ;;  %s109_s7 = int_to_ptr.vmem [resolvable:$true] %s108_s7 }
  0x29   :  { %126 = vmatprep.subr.bf16.mxu0 %v217_v0  ;;  %s185_s1 = scalar_lea.vmem %s109_s7, 64  ;;  %p190_p3 = scmp.lt.s32.totalorder %s109_s7, %s109_s7 }
  0x2a   :  { %p186_p2 = scmp.ne.s32.totalorder %s109_s7, %s185_s1  ;;  %p191_p4 = scmp.lt.s32.totalorder %s185_s1, %s185_s1 }
  0x2c   :  { %127 = vmatpush3.bf16.msra.mxu0 %v140_v2  ;;  %p192_p5 = por %p191_p4, %p190_p3 }
  0x2e   :  { %p193_p6 = pnand %p192_p5, %p186_p2 }
  0x2f   :  { %129 = vmatmul.mubr.msk.bf16.vlgmr.msra.gmra.mrb[0].mxu0 %vm56_vm1, %v39_v3 }
 0x102   :  { %v94_v4 = vpop.f32.mrb[0].mxu0 }
 0x103   :  { %v100_v5 = vpack.c.bf16 %v94_v4, %v94_v4  ;;  %v130_v6 = vpop.f32.mrb[1].mxu0 }
 0x104   :  { %v97_v7 = vpop.f32.mrb[2].mxu0 }
 0x105   :  { %101 = vst [vmem:[#allocation7] sm:$0xf] %v100_v5  ;;  %v131_v8 = vpop.f32.mrb[3].mxu0 }
 0x106   :  { %196 = shalt.err (!%p193_p6)
}
 0x107   :  { %s197_s10 = scalar_lea.hbm %s280_s2, 64 }
 0x108   :  { %p198_p7 = scmp.ne.s32.totalorder %s280_s2, %s197_s10  ;;  %p201_p8 = scmp.lt.u32.totalorder %s197_s10, %s280_s2 }
 0x10a   :  { %p203_p9 = pnand %p201_p8, %p198_p7 }
 0x10c   :  { %206 = shalt.err (!%p203_p9)
}
 0x10d   :  { %111 = dma.vmem_to_hbm [thread:$0]  %s109_s7, 64, %s280_s2, [#allocation4]  }
 0x10e   :  { %211 = dma.done.wait [#allocation4], 64  }
 0x10f   :  { %212 = vsyncadd [#allocation4], 4294967232 }
 0x110   :  { %115 = vsyncpa [#allocation3], 1 }
 0x111   :  { %116 = vsyncpa [#allocation6], 1 }
 0x112   :  { %117 = vsyncpa [#allocation4], 1 }

</bundles_post_ra>
